<compile_context>
chip_gen: v5e
topology: v5e:2x2
jax: 0.10.0
libtpu: 0.0.40
codegen_flags: <defaults>
</compile_context>

<pallas_src>
import jax
import jax.numpy as jnp
from jax.experimental import pallas as pl
from jax.experimental.pallas import tpu as pltpu


def _round_up(x, m):
    return (x + m - 1) // m * m


def _cdiv(a, b):
    return (a + b - 1) // b


def _choose_tile(dim_p, cap):
    """Largest multiple-of-128 divisor of dim_p that is <= cap (dim_p % 128 == 0)."""
    if dim_p <= cap:
        return dim_p
    t = cap
    while t >= 128:
        if dim_p % t == 0:
            return t
        t -= 128
    return 128


# ----------------------------------------------------------------------------
# Kernel 1: W_mix = sum_n y[n] * W_n   (f32 mix, one cast to matmul dtype)
# ----------------------------------------------------------------------------
def _mix_weights_kernel(y_ref, w_ref, o_ref):
    n_nets = w_ref.shape[0]                      # static
    acc = y_ref[0] * w_ref[0].astype(jnp.float32)
    for n in range(1, n_nets):                   # small static N -> unrolled
        acc = acc + y_ref[n] * w_ref[n].astype(jnp.float32)
    o_ref[...] = acc.astype(o_ref.dtype)


# ----------------------------------------------------------------------------
# Kernel 2: out = x @ W_mix + b_mix   (bias added once, in the finalize branch)
# ----------------------------------------------------------------------------
def _matmul_bias_kernel(x_ref, w_ref, b_ref, o_ref, acc_ref):
    k = pl.program_id(2)

    @pl.when(k == 0)
    def _init():
        acc_ref[...] = jnp.zeros_like(acc_ref)

    acc_ref[...] += jnp.dot(x_ref[...], w_ref[...],
                            preferred_element_type=jnp.float32)

    @pl.when(k == pl.num_programs(2) - 1)
    def _finalize():
        o_ref[...] = (acc_ref[...] + b_ref[...]).astype(o_ref.dtype)


# ----------------------------------------------------------------------------
# Wrapper: gumbel-softmax mixture weights + padding/tiling + two pallas_calls.
# ----------------------------------------------------------------------------
def mixture_weights(coeffs, temp, key):
    """y = softmax((gumbel + log softmax(coeffs)) / temp)  -- tiny N-vector."""
    mix = jax.nn.softmax(coeffs.astype(jnp.float32))
    u = jax.random.uniform(key, coeffs.shape, dtype=jnp.float32,
                           minval=1e-20, maxval=1.0)
    gumbel = -jnp.log(-jnp.log(u))
    return jax.nn.softmax((gumbel + jnp.log(mix)) / temp).astype(jnp.float32)


def _pad(a, shape, dtype):
    a = a.astype(dtype)
    if a.shape == tuple(shape):
        return a
    out = jnp.zeros(shape, dtype)
    return out.at[tuple(slice(0, s) for s in a.shape)].set(a)


def mixture_net_forward(x, w_stack, b_stack, coeffs, *, temp=1.0, key,
                        matmul_dtype=jnp.bfloat16):
    """MixtureNet forward.

    x       : [B, D_in] or [D_in]
    w_stack : [N, D_in, D_out]  (subnet n weight, pre-transposed: y = x @ w + b)
    b_stack : [N, D_out]
    coeffs  : [N]
    """
    one_dim = x.ndim == 1
    if one_dim:
        x = x[None, :]
    B, D_in = x.shape
    N, _, D_out = w_stack.shape

    y = mixture_weights(coeffs, temp, key)                       # [N] f32
    b_mix = (y @ b_stack.astype(jnp.float32))[None, :]           # [1, D_out] f32

    # ---- lane-dense padding & tiling --------------------------------------
    d_in_p = _round_up(D_in, 128)
    d_out_p = _round_up(D_out, 128)

    # Batch tiles: cap at 256 rows, balanced so padding stays < 1 tile of rows.
    n_bt = max(1, _cdiv(B, 256))
    tile_b = _round_up(_cdiv(B, n_bt), 8)
    b_p = n_bt * tile_b

    tk = _choose_tile(d_in_p, 512)     # K (d_in) tile for the matmul
    tn = _choose_tile(d_out_p, 512)    # output (d_out) tile for the matmul
    tkm = _choose_tile(d_in_p, 256)    # mix-kernel tiles (N weight slabs)
    tnm = _choose_tile(d_out_p, 256)

    x_p = _pad(x, (b_p, d_in_p), matmul_dtype)
    w_p = _pad(w_stack, (N, d_in_p, d_out_p), jnp.float32)
    b_mix_p = _pad(b_mix, (1, d_out_p), jnp.float32)

    vmem_limit = 48 * 1024 * 1024      # safe on v5e/v6e (128 MiB) and v7x (64 MiB)
    out_itemsize = jnp.dtype(x.dtype).itemsize
    mm_itemsize = jnp.dtype(matmul_dtype).itemsize

    # ---- kernel 1: pre-mix the weights ------------------------------------
    w_mix = pl.pallas_call(
        _mix_weights_kernel,
        out_shape=jax.ShapeDtypeStruct((d_in_p, d_out_p), matmul_dtype),
        grid_spec=pltpu.PrefetchScalarGridSpec(
            num_scalar_prefetch=0,
            grid=(d_in_p // tkm, d_out_p // tnm),
            in_specs=[
                # mixture weights: tiny vector in SMEM, scalar reads
                pl.BlockSpec(memory_space=pltpu.MemorySpace.SMEM),
                # full nets stack for this (d_in, d_out) tile
                pl.BlockSpec((N, tkm, tnm), lambda i, j: (0, i, j)),
            ],
            out_specs=pl.BlockSpec((tkm, tnm), lambda i, j: (i, j)),
        ),
        compiler_params=pltpu.CompilerParams(
            dimension_semantics=("parallel", "parallel"),
            vmem_limit_bytes=vmem_limit),
        cost_estimate=pl.CostEstimate(
            flops=2 * N * d_in_p * d_out_p,
            transcendentals=0,
            bytes_accessed=(N * d_in_p * d_out_p * 4
                            + d_in_p * d_out_p * mm_itemsize)),
    )(y, w_p)

    # ---- kernel 2: single matmul x @ W_mix + b_mix -------------------------
    out = pl.pallas_call(
        _matmul_bias_kernel,
        out_shape=jax.ShapeDtypeStruct((b_p, d_out_p), x.dtype),
        grid_spec=pltpu.PrefetchScalarGridSpec(
            num_scalar_prefetch=0,
            grid=(b_p // tile_b, d_out_p // tn, d_in_p // tk),
            in_specs=[
                pl.BlockSpec((tile_b, tk), lambda i, j, k: (i, k)),
                pl.BlockSpec((tk, tn), lambda i, j, k: (k, j)),
                pl.BlockSpec((1, tn), lambda i, j, k: (0, j)),
            ],
            out_specs=pl.BlockSpec((tile_b, tn), lambda i, j, k: (i, j)),
            scratch_shapes=[pltpu.VMEM((tile_b, tn), jnp.float32)],
        ),
        compiler_params=pltpu.CompilerParams(
            dimension_semantics=("parallel", "parallel", "arbitrary"),
            vmem_limit_bytes=vmem_limit),
        cost_estimate=pl.CostEstimate(
            flops=2 * b_p * d_in_p * d_out_p,
            transcendentals=0,
            bytes_accessed=(b_p * d_in_p * mm_itemsize
                            + d_in_p * d_out_p * mm_itemsize
                            + d_out_p * 4
                            + b_p * d_out_p * out_itemsize)),
    )(x_p, w_mix, b_mix_p)

    out = out[:B, :D_out]
    # torch: avg_output.squeeze(0) -- drops the batch dim only when it is 1.
    if out.shape[0] == 1:
        out = out[0]
    return out


# ----------------------------------------------------------------------------
# Pure-JAX f32 reference (same gumbel key).  Kernel uses bf16 for the mixed
# weights / activations, so compare with a loosened tolerance.
# ----------------------------------------------------------------------------
def _reference(x, w_stack, b_stack, coeffs, temp, key):
    one_dim = x.ndim == 1
    if one_dim:
        x = x[None, :]
    y = mixture_weights(coeffs, temp, key)                        # [N]
    outs = jnp.einsum('bi,nio->nbo', x.astype(jnp.float32),
                      w_stack.astype(jnp.float32))                # [N,B,Do]
    outs = outs + b_stack.astype(jnp.float32)[:, None, :]
    avg = jnp.sum(y[:, None, None] * outs, axis=0).astype(x.dtype)
    if avg.shape[0] == 1:
        avg = avg[0]
    return avg


if __name__ == "__main__":
    # Small shapes consistent with the module: 4 Linear subnets,
    # input_size=32, output_size=8, batch=8 (wrapper pads to lane-dense dims).
    B, D_in, D_out, N = 8, 32, 8, 4
    temp = 1.0

    key = jax.random.PRNGKey(0)
    k_x, k_w, k_b, k_gumbel = jax.random.split(key, 4)

    x = jax.random.normal(k_x, (B, D_in), dtype=jnp.float32)
    w_stack = jax.random.normal(k_w, (N, D_in, D_out), dtype=jnp.float32) * 0.1
    b_stack = jax.random.normal(k_b, (N, D_out), dtype=jnp.float32) * 0.1
    coeffs = jnp.ones((N,), dtype=jnp.float32)  # nn.Parameter(torch.ones(N))

    out = mixture_net_forward(x, w_stack, b_stack, coeffs,
                              temp=temp, key=k_gumbel)
    out = jax.block_until_ready(out)
    ref = _reference(x, w_stack, b_stack, coeffs, temp, k_gumbel)

    assert out.shape == (B, D_out)
    # bf16 mixed-weight matmul vs f32 reference -> loosened tolerance.
    assert jnp.allclose(out, ref, atol=2e-2, rtol=2e-2), "mismatch vs reference"

    # 1-D input path (module's unsqueeze + squeeze(0) branch).
    x1 = x[0]
    out1 = jax.block_until_ready(
        mixture_net_forward(x1, w_stack, b_stack, coeffs,
                            temp=temp, key=k_gumbel))
    ref1 = _reference(x1, w_stack, b_stack, coeffs, temp, k_gumbel)
    assert out1.shape == (D_out,)
    assert jnp.allclose(out1, ref1, atol=2e-2, rtol=2e-2), "1-D path mismatch"

    print("KERNEL_OK")
</pallas_src>

<mosaic_0001>
module attributes {stable_mosaic.version = 11 : i64} {
  func.func @_mix_weights_kernel(%arg0: i32, %arg1: i32, %arg2: memref<4xf32, #tpu.memory_space<smem>>, %arg3: memref<4x128x128xf32, #tpu.memory_space<vmem>>, %arg4: memref<128x128xbf16, #tpu.memory_space<vmem>>) attributes {dimension_semantics = [#tpu.dimension_semantics<parallel>, #tpu.dimension_semantics<parallel>], iteration_bounds = array<i64: 1, 1>, scalar_prefetch = 0 : i64, scratch_operands = 0 : i64, tpu.core_type = #tpu.core_type<tc>, window_params = [{transform_indices = @transform_0, window_bounds = array<i64: 4>}, {transform_indices = @transform_1, window_bounds = array<i64: 4, 128, 128>}, {transform_indices = @transform_2, window_bounds = array<i64: 128, 128>}]} {
    %c0 = arith.constant 0 : index
    %0 = memref.load %arg2[%c0] : memref<4xf32, #tpu.memory_space<smem>>
    %c0_0 = arith.constant 0 : index
    %c0_1 = arith.constant 0 : index
    %c0_2 = arith.constant 0 : index
    %1 = vector.load %arg3[%c0_0, %c0_1, %c0_2] : memref<4x128x128xf32, #tpu.memory_space<vmem>>, vector<1x128x128xf32>
    %2 = vector.shape_cast %1 : vector<1x128x128xf32> to vector<128x128xf32>
    %3 = vector.broadcast %0 : f32 to vector<128x128xf32>
    %4 = arith.mulf %3, %2 : vector<128x128xf32>
    %c1 = arith.constant 1 : index
    %5 = memref.load %arg2[%c1] : memref<4xf32, #tpu.memory_space<smem>>
    %c1_3 = arith.constant 1 : index
    %c0_4 = arith.constant 0 : index
    %c0_5 = arith.constant 0 : index
    %6 = vector.load %arg3[%c1_3, %c0_4, %c0_5] : memref<4x128x128xf32, #tpu.memory_space<vmem>>, vector<1x128x128xf32>
    %7 = vector.shape_cast %6 : vector<1x128x128xf32> to vector<128x128xf32>
    %8 = vector.broadcast %5 : f32 to vector<128x128xf32>
    %9 = arith.mulf %8, %7 : vector<128x128xf32>
    %10 = arith.addf %4, %9 : vector<128x128xf32>
    %c2 = arith.constant 2 : index
    %11 = memref.load %arg2[%c2] : memref<4xf32, #tpu.memory_space<smem>>
    %c2_6 = arith.constant 2 : index
    %c0_7 = arith.constant 0 : index
    %c0_8 = arith.constant 0 : index
    %12 = vector.load %arg3[%c2_6, %c0_7, %c0_8] : memref<4x128x128xf32, #tpu.memory_space<vmem>>, vector<1x128x128xf32>
    %13 = vector.shape_cast %12 : vector<1x128x128xf32> to vector<128x128xf32>
    %14 = vector.broadcast %11 : f32 to vector<128x128xf32>
    %15 = arith.mulf %14, %13 : vector<128x128xf32>
    %16 = arith.addf %10, %15 : vector<128x128xf32>
    %c3 = arith.constant 3 : index
    %17 = memref.load %arg2[%c3] : memref<4xf32, #tpu.memory_space<smem>>
    %c3_9 = arith.constant 3 : index
    %c0_10 = arith.constant 0 : index
    %c0_11 = arith.constant 0 : index
    %18 = vector.load %arg3[%c3_9, %c0_10, %c0_11] : memref<4x128x128xf32, #tpu.memory_space<vmem>>, vector<1x128x128xf32>
    %19 = vector.shape_cast %18 : vector<1x128x128xf32> to vector<128x128xf32>
    %20 = vector.broadcast %17 : f32 to vector<128x128xf32>
    %21 = arith.mulf %20, %19 : vector<128x128xf32>
    %22 = arith.addf %16, %21 : vector<128x128xf32>
    %23 = arith.truncf %22 : vector<128x128xf32> to vector<128x128xbf16>
    %c0_12 = arith.constant 0 : index
    %c0_13 = arith.constant 0 : index
    %24 = vector.load %arg4[%c0_12, %c0_13] : memref<128x128xbf16, #tpu.memory_space<vmem>>, vector<128x128xbf16>
    tpu.vector_store %arg4[%c0_12, %c0_13], %23 {strides = array<i32>} : memref<128x128xbf16, #tpu.memory_space<vmem>>, vector<128x128xbf16>,
    return
  }
  func.func @transform_0(%arg0: i32, %arg1: i32) -> i32 {
    %c0_i32 = arith.constant 0 : i32
    %c0_i32_0 = arith.constant 0 : i32
    return %c0_i32 : i32
  }
  func.func @transform_1(%arg0: i32, %arg1: i32) -> (i32, i32, i32) {
    %c0_i32 = arith.constant 0 : i32
    %c0_i32_0 = arith.constant 0 : i32
    return %c0_i32, %arg0, %arg1 : i32, i32, i32
  }
  func.func @transform_2(%arg0: i32, %arg1: i32) -> (i32, i32) {
    %c0_i32 = arith.constant 0 : i32
    return %arg0, %arg1 : i32, i32
  }
}

</mosaic_0001>

<bundles_post_ra>
// kernel: tpu_custom_call.1
= control target key start
LH: loop header
LB: loop body
LE: loop exit
PB: predicated region body
PF: predicated region fallthrough
CT: control target
= control target key end

     0   :  { %7 = vsyncpa [#allocation5], 0  ;;  %s506_s0 = inlined_call_operand.hbm [shape: f32[4], index: 0, kind: input, shape index: {}]   ;;  %s507_s1 = inlined_call_operand.hbm [shape: f32[4,128,128], index: 1, kind: input, shape index: {}]   ;;  %s508_s2 = inlined_call_operand.hbm [shape: bf16[128,128], index: 2, kind: output, shape index: {}]  }
   0x1   :  { %8 = vsyncpa [#allocation3], 0 }
   0x2   :  { %9 = vsyncpa [#allocation4], 0  ;;  %s15_s11 = sshll.u32 %s506_s0, 4  ;;  %s23_s14 = sshll.u32 %s507_s1, 4  ;;  %s16_s11 = int_to_ptr.hbm [resolvable:$true] %s15_s11  ;;  %s24_s14 = int_to_ptr.hbm [resolvable:$true] %s23_s14 }
   0x3   :  { %s403_s15 = smov [#allocation2]   ;;  %s404_s16 = smov [#allocation6]  }
   0x4   :  { %18 = dma.hbm_to_smem %s16_s11, 16, %s403_s15, [#allocation5]  }
   0x5   :  { %s25_s17 = sshll.u32 %s404_s16, 4  ;;  %s405_s18 = smov 128   ;;  %s26_s17 = int_to_ptr.vmem [resolvable:$true] %s25_s17 }
   0x6   :  { %s406_s19 = smov 8  }
   0x7   :  { %31 = dma.hbm_to_vmem [thread:$0]  %s24_s14, 8192, %s26_s17, [#allocation3], %s405_s18, %s405_s18, %s406_s19  }
   0x8   :  { %397 = dma.done.wait [#allocation5], 16  }
   0x9   :  { %398 = vsyncadd [#allocation5], 4294967280 }
   0xa   :  { %399 = dma.done.wait [#allocation3], 8192  }
   0xb   :  { %400 = vsyncadd [#allocation3], 4294959104 }
   0xc   :  { %40 = sfence }
   0xd   :  { %s41_s0 = sld [smem:[#allocation2]]  ;;  %v42_v0 = vld [vmem:[#allocation6] sm:$0xff]  ;;  %v43_v1 = vld [vmem:[#allocation6 + $0x8] sm:$0xff]  ;;  %v44_v2 = vld [vmem:[#allocation6 + $0x10] sm:$0xff]  ;;  %s407_s1 = smov [#allocation7]  }
   0xe   :  { %s280_s20 = sld [smem:[#allocation2 + $0x1]]  ;;  %v77_v3 = vld [vmem:[#allocation6 + $0x80] sm:$0xff]  ;;  %v78_v4 = vld [vmem:[#allocation6 + $0x88] sm:$0xff]  ;;  %v45_v5 = vld [vmem:[#allocation6 + $0x18] sm:$0xff]  ;;  %s264_s23 = sshll.u32 %s407_s1, 4  ;;  %s265_s23 = int_to_ptr.vmem [resolvable:$true] %s264_s23 }
   0xf   :  { %s281_s21 = sld [smem:[#allocation2 + $0x2]]  ;;  %v128_v7 = vld [vmem:[#allocation6 + $0x100] sm:$0xff]  ;;  %v129_v8 = vld [vmem:[#allocation6 + $0x108] sm:$0xff]  ;;  %v79_v9 = vld [vmem:[#allocation6 + $0x90] sm:$0xff]  ;;  %s266_s26 = sshll.u32 %s508_s2, 4  ;;  %s267_s26 = int_to_ptr.hbm [resolvable:$true] %s266_s26 }
  0x10   :  { %s282_s22 = sld [smem:[#allocation2 + $0x3]]  ;;  %v179_v13 = vld [vmem:[#allocation6 + $0x180] sm:$0xff]  ;;  %v180_v14 = vld [vmem:[#allocation6 + $0x188] sm:$0xff]  ;;  %v80_v20 = vld [vmem:[#allocation6 + $0x98] sm:$0xff]  ;;  %s408_s27 = smov 64  }
  0x11   :  { %v130_v21 = vld [vmem:[#allocation6 + $0x110] sm:$0xff]  ;;  %v131_v22 = vld [vmem:[#allocation6 + $0x118] sm:$0xff]  ;;  %v46_v33 = vld [vmem:[#allocation6 + $0x20] sm:$0xff]  ;;  %s409_s28 = smov 4  }
  0x12   :  { %v181_v27 = vld [vmem:[#allocation6 + $0x190] sm:$0xff]  ;;  %v182_v28 = vld [vmem:[#allocation6 + $0x198] sm:$0xff]  ;;  %v47_v34 = vld [vmem:[#allocation6 + $0x28] sm:$0xff] }
  0x13   :  { %v431_v6 = vstv %s41_s0  ;;  %v81_v39 = vld [vmem:[#allocation6 + $0xa0] sm:$0xff]  ;;  %v82_v40 = vld [vmem:[#allocation6 + $0xa8] sm:$0xff]  ;;  %v48_v57 = vld [vmem:[#allocation6 + $0x30] sm:$0xff] }
  0x14   :  { %v59_v10 = vmul.f32 %v431_v6, %v42_v0  ;;  %v60_v11 = vmul.f32 %v431_v6, %v43_v1  ;;  %v435_v12 = vstv %s280_s20  ;;  %v61_v15 = vmul.f32 %v431_v6, %v44_v2  ;;  %v132_v45 = vld [vmem:[#allocation6 + $0x120] sm:$0xff]  ;;  %v133_v46 = vld [vmem:[#allocation6 + $0x128] sm:$0xff]  ;;  %v49_v58 = vld [vmem:[#allocation6 + $0x38] sm:$0xff] }
  0x15   :  { %v94_v16 = vmul.f32 %v435_v12, %v77_v3  ;;  %v95_v17 = vmul.f32 %v435_v12, %v78_v4  ;;  %v440_v18 = vstv %s281_s21  ;;  %v62_v19 = vmul.f32 %v431_v6, %v45_v5  ;;  %v183_v51 = vld [vmem:[#allocation6 + $0x1a0] sm:$0xff]  ;;  %v184_v56 = vld [vmem:[#allocation6 + $0x1a8] sm:$0xff]  ;;  %v83_v63 = vld [vmem:[#allocation6 + $0xb0] sm:$0xff] }
  0x16   :  { %v145_v23 = vmul.f32 %v440_v18, %v128_v7  ;;  %v146_v24 = vmul.f32 %v440_v18, %v129_v8  ;;  %v445_v25 = vstv %s282_s22  ;;  %v96_v26 = vmul.f32 %v435_v12, %v79_v9  ;;  %v84_v0 = vld [vmem:[#allocation6 + $0xb8] sm:$0xff]  ;;  %v134_v5 = vld [vmem:[#allocation6 + $0x130] sm:$0xff] }
  0x17   :  { %v110_v29 = vadd.f32 %v94_v16, %v59_v10  ;;  %v111_v30 = vadd.f32 %v95_v17, %v60_v11  ;;  %v196_v31 = vmul.f32 %v445_v25, %v179_v13  ;;  %v197_v32 = vmul.f32 %v445_v25, %v180_v14  ;;  %v135_v7 = vld [vmem:[#allocation6 + $0x138] sm:$0xff]  ;;  %v185_v8 = vld [vmem:[#allocation6 + $0x1b0] sm:$0xff] }
  0x18   :  { %v97_v35 = vmul.f32 %v435_v12, %v80_v20  ;;  %v112_v36 = vadd.f32 %v96_v26, %v61_v15  ;;  %v147_v37 = vmul.f32 %v440_v18, %v130_v21  ;;  %v148_v38 = vmul.f32 %v440_v18, %v131_v22  ;;  %v186_v14 = vld [vmem:[#allocation6 + $0x1b8] sm:$0xff]  ;;  %v50_v20 = vld [vmem:[#allocation6 + $0x40] sm:$0xff]  ;;  %v51_v21 = vld [vmem:[#allocation6 + $0x48] sm:$0xff] }
  0x19   :  { %v161_v41 = vadd.f32 %v145_v23, %v110_v29  ;;  %v162_v42 = vadd.f32 %v146_v24, %v111_v30  ;;  %v198_v43 = vmul.f32 %v445_v25, %v181_v27  ;;  %v199_v44 = vmul.f32 %v445_v25, %v182_v28  ;;  %v85_v22 = vld [vmem:[#allocation6 + $0xc0] sm:$0xff]  ;;  %v86_v28 = vld [vmem:[#allocation6 + $0xc8] sm:$0xff] }
  0x1a   :  { %v113_v47 = vadd.f32 %v97_v35, %v62_v19  ;;  %v163_v48 = vadd.f32 %v147_v37, %v112_v36  ;;  %v63_v49 = vmul.f32 %v431_v6, %v46_v33  ;;  %v64_v50 = vmul.f32 %v431_v6, %v47_v34  ;;  %v136_v33 = vld [vmem:[#allocation6 + $0x140] sm:$0xff]  ;;  %v137_v34 = vld [vmem:[#allocation6 + $0x148] sm:$0xff] }
  0x1b   :  { %v212_v52 = vadd.f32 %v196_v31, %v161_v41  ;;  %v213_v53 = vadd.f32 %v197_v32, %v162_v42  ;;  %v98_v54 = vmul.f32 %v435_v12, %v81_v39  ;;  %v99_v55 = vmul.f32 %v435_v12, %v82_v40  ;;  %v187_v35 = vld [vmem:[#allocation6 + $0x1c0] sm:$0xff]  ;;  %v188_v40 = vld [vmem:[#allocation6 + $0x1c8] sm:$0xff] }
  0x1c   :  { %v164_v59 = vadd.f32 %v148_v38, %v113_v47  ;;  %v214_v60 = vadd.f32 %v198_v43, %v163_v48  ;;  %v149_v61 = vmul.f32 %v440_v18, %v132_v45  ;;  %v150_v62 = vmul.f32 %v440_v18, %v133_v46  ;;  %v52_v45 = vld [vmem:[#allocation6 + $0x50] sm:$0xff]  ;;  %v53_v46 = vld [vmem:[#allocation6 + $0x58] sm:$0xff] }
  0x1d   :  { %v286_v1 = vpack.c.bf16 %v213_v53, %v212_v52  ;;  %v114_v2 = vadd.f32 %v98_v54, %v63_v49  ;;  %v115_v3 = vadd.f32 %v99_v55, %v64_v50  ;;  %v200_v4 = vmul.f32 %v445_v25, %v183_v51  ;;  %v87_v47 = vld [vmem:[#allocation6 + $0xd0] sm:$0xff]  ;;  %v88_v52 = vld [vmem:[#allocation6 + $0xd8] sm:$0xff] }
  0x1e   :  { %v215_v9 = vadd.f32 %v199_v44, %v164_v59  ;;  %v201_v10 = vmul.f32 %v445_v25, %v184_v56  ;;  %v65_v11 = vmul.f32 %v431_v6, %v48_v57  ;;  %v66_v13 = vmul.f32 %v431_v6, %v49_v58  ;;  %v138_v53 = vld [vmem:[#allocation6 + $0x150] sm:$0xff]  ;;  %v139_v58 = vld [vmem:[#allocation6 + $0x158] sm:$0xff] }
  0x1f   :  { %287 = vst [vmem:[#allocation7] sm:$0xff] %v286_v1   ;;  %v165_v15 = vadd.f32 %v149_v61, %v114_v2  ;;  %v166_v16 = vadd.f32 %v150_v62, %v115_v3  ;;  %v100_v17 = vmul.f32 %v435_v12, %v83_v63  ;;  %v101_v19 = vmul.f32 %v435_v12, %v84_v0  ;;  %v189_v59 = vld [vmem:[#allocation6 + $0x1d0] sm:$0xff]  ;;  %v190_v0 = vld [vmem:[#allocation6 + $0x1d8] sm:$0xff]  ;;  %v54_v1 = vld [vmem:[#allocation6 + $0x60] sm:$0xff] }
  0x20   :  { %v291_v23 = vpack.c.bf16 %v215_v9, %v214_v60  ;;  %v151_v24 = vmul.f32 %v440_v18, %v134_v5  ;;  %v152_v26 = vmul.f32 %v440_v18, %v135_v7  ;;  %v202_v27 = vmul.f32 %v445_v25, %v185_v8  ;;  %v55_v7 = vld [vmem:[#allocation6 + $0x68] sm:$0xff]  ;;  %v89_v8 = vld [vmem:[#allocation6 + $0xe0] sm:$0xff] }
  0x21   :  { %v216_v29 = vadd.f32 %v200_v4, %v165_v15  ;;  %v217_v30 = vadd.f32 %v201_v10, %v166_v16  ;;  %v116_v31 = vadd.f32 %v100_v17, %v65_v11  ;;  %v117_v32 = vadd.f32 %v101_v19, %v66_v13  ;;  %v90_v9 = vld [vmem:[#allocation6 + $0xe8] sm:$0xff]  ;;  %v140_v15 = vld [vmem:[#allocation6 + $0x160] sm:$0xff] }
  0x22   :  { %323 = vst [vmem:[#allocation7 + $0x8] sm:$0xff] %v291_v23   ;;  %v203_v36 = vmul.f32 %v445_v25, %v186_v14  ;;  %v67_v37 = vmul.f32 %v431_v6, %v50_v20  ;;  %v68_v38 = vmul.f32 %v431_v6, %v51_v21  ;;  %v102_v39 = vmul.f32 %v435_v12, %v85_v22  ;;  %v141_v16 = vld [vmem:[#allocation6 + $0x168] sm:$0xff]  ;;  %v191_v22 = vld [vmem:[#allocation6 + $0x1e0] sm:$0xff] }
  0x23   :  { %v296_v41 = vpack.c.bf16 %v217_v30, %v216_v29  ;;  %v167_v42 = vadd.f32 %v151_v24, %v116_v31  ;;  %v168_v43 = vadd.f32 %v152_v26, %v117_v32  ;;  %v103_v44 = vmul.f32 %v435_v12, %v86_v28  ;;  %v192_v28 = vld [vmem:[#allocation6 + $0x1e8] sm:$0xff]  ;;  %v56_v29 = vld [vmem:[#allocation6 + $0x70] sm:$0xff]  ;;  %v57_v30 = vld [vmem:[#allocation6 + $0x78] sm:$0xff] }
  0x24   :  { %v118_v48 = vadd.f32 %v102_v39, %v67_v37  ;;  %v153_v49 = vmul.f32 %v440_v18, %v136_v33  ;;  %v154_v50 = vmul.f32 %v440_v18, %v137_v34  ;;  %v204_v51 = vmul.f32 %v445_v25, %v187_v35  ;;  %v91_v35 = vld [vmem:[#allocation6 + $0xf0] sm:$0xff] }
  0x25   :  { %324 = vst [vmem:[#allocation7 + $0x10] sm:$0xff] %v296_v41   ;;  %v218_v54 = vadd.f32 %v202_v27, %v167_v42  ;;  %v219_v55 = vadd.f32 %v203_v36, %v168_v43  ;;  %v119_v56 = vadd.f32 %v103_v44, %v68_v38  ;;  %v205_v57 = vmul.f32 %v445_v25, %v188_v40  ;;  %v92_v36 = vld [vmem:[#allocation6 + $0xf8] sm:$0xff]  ;;  %v142_v41 = vld [vmem:[#allocation6 + $0x170] sm:$0xff] }
  0x26   :  { %v169_v60 = vadd.f32 %v153_v49, %v118_v48  ;;  %v69_v61 = vmul.f32 %v431_v6, %v52_v45  ;;  %v70_v62 = vmul.f32 %v431_v6, %v53_v46  ;;  %v104_v63 = vmul.f32 %v435_v12, %v87_v47  ;;  %v143_v42 = vld [vmem:[#allocation6 + $0x178] sm:$0xff]  ;;  %v193_v43 = vld [vmem:[#allocation6 + $0x1f0] sm:$0xff] }
  0x27   :  { %v301_v2 = vpack.c.bf16 %v219_v55, %v218_v54  ;;  %v170_v3 = vadd.f32 %v154_v50, %v119_v56  ;;  %v105_v4 = vmul.f32 %v435_v12, %v88_v52  ;;  %v155_v5 = vmul.f32 %v440_v18, %v138_v53  ;;  %v194_v52 = vld [vmem:[#allocation6 + $0x1f8] sm:$0xff] }
  0x28   :  { %v220_v10 = vadd.f32 %v204_v51, %v169_v60  ;;  %v120_v11 = vadd.f32 %v104_v63, %v69_v61  ;;  %v156_v13 = vmul.f32 %v440_v18, %v139_v58  ;;  %v206_v14 = vmul.f32 %v445_v25, %v189_v59 }
  0x29   :  { %325 = vst [vmem:[#allocation7 + $0x18] sm:$0xff] %v301_v2   ;;  %v221_v17 = vadd.f32 %v205_v57, %v170_v3  ;;  %v121_v19 = vadd.f32 %v105_v4, %v70_v62  ;;  %v207_v20 = vmul.f32 %v445_v25, %v190_v0  ;;  %v71_v21 = vmul.f32 %v431_v6, %v54_v1 }
  0x2a   :  { %v171_v23 = vadd.f32 %v155_v5, %v120_v11  ;;  %v72_v24 = vmul.f32 %v431_v6, %v55_v7  ;;  %v106_v26 = vmul.f32 %v435_v12, %v89_v8  ;;  %v107_v27 = vmul.f32 %v435_v12, %v90_v9 }
  0x2b   :  { %v306_v31 = vpack.c.bf16 %v221_v17, %v220_v10  ;;  %v172_v32 = vadd.f32 %v156_v13, %v121_v19  ;;  %v157_v33 = vmul.f32 %v440_v18, %v140_v15  ;;  %v158_v34 = vmul.f32 %v440_v18, %v141_v16 }
  0x2c   :  { %v222_v37 = vadd.f32 %v206_v14, %v171_v23  ;;  %v122_v38 = vadd.f32 %v106_v26, %v71_v21  ;;  %v123_v39 = vadd.f32 %v107_v27, %v72_v24  ;;  %v208_v40 = vmul.f32 %v445_v25, %v191_v22 }
  0x2d   :  { %326 = vst [vmem:[#allocation7 + $0x20] sm:$0xff] %v306_v31   ;;  %v223_v44 = vadd.f32 %v207_v20, %v172_v32  ;;  %v209_v45 = vmul.f32 %v445_v25, %v192_v28  ;;  %v73_v46 = vmul.f32 %v431_v6, %v56_v29  ;;  %v74_v47 = vmul.f32 %v431_v6, %v57_v30 }
  0x2e   :  { %v173_v48 = vadd.f32 %v157_v33, %v122_v38  ;;  %v174_v49 = vadd.f32 %v158_v34, %v123_v39  ;;  %v108_v50 = vmul.f32 %v435_v12, %v91_v35  ;;  %v109_v51 = vmul.f32 %v435_v12, %v92_v36 }
  0x2f   :  { %v311_v53 = vpack.c.bf16 %v223_v44, %v222_v37  ;;  %v159_v54 = vmul.f32 %v440_v18, %v142_v41  ;;  %v160_v55 = vmul.f32 %v440_v18, %v143_v42  ;;  %v210_v56 = vmul.f32 %v445_v25, %v193_v43 }
  0x30   :  { %v224_v57 = vadd.f32 %v208_v40, %v173_v48  ;;  %v225_v58 = vadd.f32 %v209_v45, %v174_v49  ;;  %v124_v59 = vadd.f32 %v108_v50, %v73_v46  ;;  %v125_v60 = vadd.f32 %v109_v51, %v74_v47 }
  0x31   :  { %327 = vst [vmem:[#allocation7 + $0x28] sm:$0xff] %v311_v53   ;;  %v211_v6 = vmul.f32 %v445_v25, %v194_v52 }
  0x32   :  { %v316_v61 = vpack.c.bf16 %v225_v58, %v224_v57  ;;  %v175_v62 = vadd.f32 %v159_v54, %v124_v59  ;;  %v176_v63 = vadd.f32 %v160_v55, %v125_v60 }
  0x34   :  { %328 = vst [vmem:[#allocation7 + $0x30] sm:$0xff] %v316_v61   ;;  %v226_v12 = vadd.f32 %v210_v56, %v175_v62  ;;  %v227_v18 = vadd.f32 %v211_v6, %v176_v63 }
  0x36   :  { %v321_v0 = vpack.c.bf16 %v227_v18, %v226_v12 }
  0x38   :  { %329 = vst [vmem:[#allocation7 + $0x38] sm:$0xff] %v321_v0  }
  0x39   :  { %272 = dma.vmem_to_hbm [thread:$0]  %s265_s23, 1024, %s267_s26, [#allocation4], %s408_s27, %s408_s27, %s409_s28  }
  0x3a   :  { %401 = dma.done.wait [#allocation4], 1024  }
  0x3b   :  { %402 = vsyncadd [#allocation4], 4294966272 }
  0x3c   :  { %277 = vsyncpa [#allocation3], 1 }
  0x3d   :  { %278 = vsyncpa [#allocation4], 1 }
  0x3e   :  { %279 = vsyncpa [#allocation5], 1 }

</bundles_post_ra>
